<compile_context>
chip_gen: v7x
topology: tpu7x:2x2x1
jax: 0.10.0
libtpu: 0.0.40
codegen_flags: <defaults>
</compile_context>

<pallas_src>
import functools
import math

import jax
import jax.numpy as jnp
from jax import lax
from jax.experimental import pallas as pl
from jax.experimental.pallas import tpu as pltpu


_NEG_INF = -1e30  # large finite causal bias (avoids inf - inf = NaN in the online update)


def _flash_mha_kernel(qi_map_ref, ki_map_ref,              # scalar prefetch (SMEM)
                      q_ref, k_ref, v_ref, wo_ref, bo_ref,  # inputs (VMEM tiles)
                      o_ref,                                 # output tile
                      m_scr, l_scr, acc_scr,                 # VMEM scratch
                      *, q_blk, kv_blk, d_out):
    p = pl.program_id(1)
    qi = qi_map_ref[p]
    ki = ki_map_ref[p]

    @pl.when(ki == 0)
    def _init():
        m_scr[...] = jnp.full_like(m_scr, _NEG_INF)
        l_scr[...] = jnp.zeros_like(l_scr)
        acc_scr[...] = jnp.zeros_like(acc_scr)

    q3 = q_ref[0]                      # (H, Tq, hd)   bf16, pre-scaled by 1/sqrt(hd)
    k3 = k_ref[0]                      # (H, Tkv, hd)  bf16
    v3 = v_ref[0]                      # (H, Tkv, hd)  bf16

    # Scores: heads batched on the leading axis, K consumed in native layout.
    s = jnp.einsum('hqd,hkd->hqk', q3, k3,
                   preferred_element_type=jnp.float32)      # (H, Tq, Tkv) f32

    # Causal mask only on the diagonal tile (q_blk == kv_blk); strictly-below
    # tiles need no mask at all.
    def _masked(s_):
        r = lax.broadcasted_iota(jnp.int32, (1, q_blk, kv_blk), 1)
        c = lax.broadcasted_iota(jnp.int32, (1, q_blk, kv_blk), 2)
        return s_ + jnp.where(c > r, _NEG_INF, 0.0)

    s = lax.cond(ki == qi, _masked, lambda s_: s_, s)

    # Online softmax update (all f32 VPU math).
    m_prev = m_scr[...]                                     # (H, Tq, 1)
    m_new = jnp.maximum(m_prev, jnp.max(s, axis=-1, keepdims=True))
    alpha = jnp.exp(m_prev - m_new)
    prob = jnp.exp(s - m_new)                               # (H, Tq, Tkv) f32
    l_scr[...] = alpha * l_scr[...] + jnp.sum(prob, axis=-1, keepdims=True)
    acc_scr[...] = alpha * acc_scr[...] + jnp.einsum(
        'hqk,hkd->hqd', prob.astype(v3.dtype), v3,          # bf16 MXU operands
        preferred_element_type=jnp.float32)
    m_scr[...] = m_new
    # TODO(synk): attention-weight dropout omitted (eval mode / p = 0).

    @pl.when(ki == qi)   # diagonal block == last KV tile for this query tile
    def _finalize():
        inv_l = pl.reciprocal(l_scr[...], approx=True)      # EUP slot
        ctx = acc_scr[...] * inv_l                          # (H, Tq, hd) f32
        # One-time relayout to a lane-dense (Tq, D_out) slab, then a single
        # dense output-projection matmul (contraction dim = D_out).
        ctx2 = jnp.swapaxes(ctx, 0, 1).reshape(q_blk, d_out).astype(wo_ref.dtype)
        out = jnp.dot(ctx2, wo_ref[...], preferred_element_type=jnp.float32)
        o_ref[0] = (out + bo_ref[...]).astype(o_ref.dtype)


def multi_head_attention(x, wq, wk, wv, wo, bo, *, num_heads,
                         block_size=128, compute_dtype=jnp.bfloat16):
    """Causal multi-head attention forward.  Weights are [in, out] (transposed
    vs torch.nn.Linear); `bo` is the output-projection bias."""
    B, T, D_in = x.shape
    D_out = wq.shape[1]
    H = num_heads
    assert D_out % H == 0
    hd = D_out // H
    scale = 1.0 / math.sqrt(hd)

    # Tile size: 128 is safe on all generations (matches v5e's 4x128x128 MXU);
    # on v6e/v7x pass block_size=256 to fill the 2x256x256 MXU once VMEM allows.
    blk = T if T < block_size else block_size
    assert T % blk == 0, "sequence length must be a multiple of the block size"
    # TODO(synk): pad T to a multiple of the block size for ragged lengths.
    nq = T // blk

    # --- Fused Q|K|V projection: ONE matmul for the whole sequence (no
    # per-(qi,ki) recomputation), 1/sqrt(hd) folded into W_q, bf16 operands
    # with f32 accumulation, head-major output so the kernel never relayouts Q.
    wqkv = jnp.concatenate([wq * scale, wk, wv], axis=1).astype(compute_dtype)
    qkv = jnp.einsum('btd,de->bte', x.astype(compute_dtype), wqkv,
                     preferred_element_type=jnp.float32)
    qkv = qkv.reshape(B, T, 3, H, hd).transpose(2, 0, 3, 1, 4).astype(compute_dtype)
    q, k, v = qkv[0], qkv[1], qkv[2]                        # each (B, H, T, hd)

    # --- Lower-triangular (qi, ki) tile schedule: nq*(nq+1)/2 steps instead of
    # nq*nq; ki runs 0..qi, so ki == 0 is init and ki == qi is finalize.
    qi_map = jnp.asarray([qi for qi in range(nq) for _ in range(qi + 1)], jnp.int32)
    ki_map = jnp.asarray([ki for qi in range(nq) for ki in range(qi + 1)], jnp.int32)
    n_pairs = int(qi_map.shape[0])

    kernel = functools.partial(_flash_mha_kernel, q_blk=blk, kv_blk=blk, d_out=D_out)

    # NOTE: W_o / b_o have constant index maps; with pipeline_mode=pl.Buffered(1)
    # they could be single-buffered to halve their VMEM footprint (matters most
    # on v7x's 64 MiB VMEM).  Left double-buffered here for portability.
    return pl.pallas_call(
        kernel,
        out_shape=jax.ShapeDtypeStruct((B, T, D_out), x.dtype),
        grid_spec=pltpu.PrefetchScalarGridSpec(
            num_scalar_prefetch=2,
            grid=(B, n_pairs),
            in_specs=[
                pl.BlockSpec((1, H, blk, hd), lambda b, p, qi, ki: (b, 0, qi[p], 0)),  # Q
                pl.BlockSpec((1, H, blk, hd), lambda b, p, qi, ki: (b, 0, ki[p], 0)),  # K
                pl.BlockSpec((1, H, blk, hd), lambda b, p, qi, ki: (b, 0, ki[p], 0)),  # V
                pl.BlockSpec((D_out, D_out), lambda b, p, qi, ki: (0, 0)),             # W_o
                pl.BlockSpec((1, D_out), lambda b, p, qi, ki: (0, 0)),                 # b_o
            ],
            out_specs=pl.BlockSpec((1, blk, D_out), lambda b, p, qi, ki: (b, qi[p], 0)),
            scratch_shapes=[
                pltpu.VMEM((H, blk, 1), jnp.float32),       # running max
                pltpu.VMEM((H, blk, 1), jnp.float32),       # running denominator
                pltpu.VMEM((H, blk, hd), jnp.float32),      # running context accumulator
            ]),
        compiler_params=pltpu.CompilerParams(
            dimension_semantics=("parallel", "arbitrary"),
            vmem_limit_bytes=48 * 1024 * 1024),             # leaves headroom on v7x (64 MiB/TC)
    )(qi_map, ki_map, q, k, v,
      wo.astype(compute_dtype), bo.reshape(1, D_out).astype(jnp.float32))


def _reference(x, wq, wk, wv, wo, bo, num_heads):
    B, T, _ = x.shape
    D_out = wq.shape[1]
    hd = D_out // num_heads
    q = (x @ wq).reshape(B, T, num_heads, hd).transpose(0, 2, 1, 3)
    k = (x @ wk).reshape(B, T, num_heads, hd).transpose(0, 2, 1, 3)
    v = (x @ wv).reshape(B, T, num_heads, hd).transpose(0, 2, 1, 3)
    scores = jnp.einsum("bhqd,bhkd->bhqk", q, k)
    mask = jnp.triu(jnp.ones((T, T), bool), k=1)
    scores = jnp.where(mask, -jnp.inf, scores)
    w = jax.nn.softmax(scores / math.sqrt(hd), axis=-1)
    ctx = jnp.einsum("bhqk,bhkd->bhqd", w, v).transpose(0, 2, 1, 3).reshape(B, T, D_out)
    return ctx @ wo + bo


def _run_case(key, B, T, D_in, D_out, H, tol):
    kx, kq, kk, kv, kw, kb = jax.random.split(key, 6)
    x = jax.random.normal(kx, (B, T, D_in), dtype=jnp.float32)
    wq = jax.random.normal(kq, (D_in, D_out), dtype=jnp.float32) * 0.05
    wk = jax.random.normal(kk, (D_in, D_out), dtype=jnp.float32) * 0.05
    wv = jax.random.normal(kv, (D_in, D_out), dtype=jnp.float32) * 0.05
    wo = jax.random.normal(kw, (D_out, D_out), dtype=jnp.float32) * 0.05
    bo = jax.random.normal(kb, (D_out,), dtype=jnp.float32) * 0.05

    mha = jax.jit(functools.partial(multi_head_attention, num_heads=H))
    out = jax.block_until_ready(mha(x, wq, wk, wv, wo, bo))
    ref = _reference(x, wq, wk, wv, wo, bo, H)
    assert out.shape == (B, T, D_out)
    err = float(jnp.max(jnp.abs(out - ref)))
    # Tolerance accounts for bf16 MXU operands vs the f32 reference.
    assert jnp.allclose(out, ref, atol=tol, rtol=tol), (
        f"mismatch vs reference (max abs err {err:.3e})")


if __name__ == "__main__":
    key = jax.random.PRNGKey(0)
    k1, k2 = jax.random.split(key)
    # Small config matching the module's toy shapes (single (qi, ki) tile pair).
    _run_case(k1, B=2, T=8, D_in=32, D_out=32, H=4, tol=2e-2)
    # Larger config exercising the triangular (qi, ki) tile schedule + tiling.
    _run_case(k2, B=2, T=256, D_in=128, D_out=128, H=4, tol=3e-2)
    print("KERNEL_OK")
</pallas_src>

<mosaic_0001>
module attributes {stable_mosaic.version = 11 : i64} {
  func.func @_flash_mha_kernel(%arg0: i32, %arg1: i32, %arg2: memref<1xi32, #tpu.memory_space<smem>>, %arg3: memref<1xi32, #tpu.memory_space<smem>>, %arg4: memref<1x4x8x8xbf16, #tpu.memory_space<vmem>>, %arg5: memref<1x4x8x8xbf16, #tpu.memory_space<vmem>>, %arg6: memref<1x4x8x8xbf16, #tpu.memory_space<vmem>>, %arg7: memref<32x32xbf16, #tpu.memory_space<vmem>>, %arg8: memref<1x32xf32, #tpu.memory_space<vmem>>, %arg9: memref<1x8x32xf32, #tpu.memory_space<vmem>>, %arg10: memref<4x8x1xf32, #tpu.memory_space<vmem>>, %arg11: memref<4x8x1xf32, #tpu.memory_space<vmem>>, %arg12: memref<4x8x8xf32, #tpu.memory_space<vmem>>) attributes {dimension_semantics = [#tpu.dimension_semantics<parallel>, #tpu.dimension_semantics<arbitrary>], iteration_bounds = array<i64: 2, 1>, scalar_prefetch = 2 : i64, scratch_operands = 3 : i64, tpu.core_type = #tpu.core_type<tc>, window_params = [{transform_indices = @transform_0, window_bounds = array<i64: 1, 4, 8, 8>}, {transform_indices = @transform_1, window_bounds = array<i64: 1, 4, 8, 8>}, {transform_indices = @transform_2, window_bounds = array<i64: 1, 4, 8, 8>}, {pipeline_mode = #tpu.pipeline_mode<synchronous>, transform_indices = @transform_3, window_bounds = array<i64: 32, 32>}, {pipeline_mode = #tpu.pipeline_mode<synchronous>, transform_indices = @transform_4, window_bounds = array<i64: 1, 32>}, {transform_indices = @transform_5, window_bounds = array<i64: 1, 8, 32>}]} {
    %0 = arith.index_cast %arg1 : i32 to index
    %1 = memref.load %arg2[%0] : memref<1xi32, #tpu.memory_space<smem>>
    %2 = arith.index_cast %arg1 : i32 to index
    %3 = memref.load %arg3[%2] : memref<1xi32, #tpu.memory_space<smem>>
    %c0_i32 = arith.constant 0 : i32
    %4 = arith.cmpi eq, %3, %c0_i32 : i32
    %5 = arith.extui %4 : i1 to i32
    %c0_i32_0 = arith.constant 0 : i32
    %6 = arith.cmpi ne, %5, %c0_i32_0 : i32
    scf.if %6 {
      %cst_35 = arith.constant -1.000000e+30 : f32
      %44 = vector.broadcast %cst_35 : f32 to vector<4x8x1xf32>
      %c0_36 = arith.constant 0 : index
      %c0_37 = arith.constant 0 : index
      %c0_38 = arith.constant 0 : index
      %45 = vector.load %arg10[%c0_36, %c0_37, %c0_38] : memref<4x8x1xf32, #tpu.memory_space<vmem>>, vector<4x8x1xf32>
      tpu.vector_store %arg10[%c0_36, %c0_37, %c0_38], %44 {strides = array<i32>} : memref<4x8x1xf32, #tpu.memory_space<vmem>>, vector<4x8x1xf32>,
      %cst_39 = arith.constant 0.000000e+00 : f32
      %46 = vector.broadcast %cst_39 : f32 to vector<4x8x1xf32>
      %c0_40 = arith.constant 0 : index
      %c0_41 = arith.constant 0 : index
      %c0_42 = arith.constant 0 : index
      %47 = vector.load %arg11[%c0_40, %c0_41, %c0_42] : memref<4x8x1xf32, #tpu.memory_space<vmem>>, vector<4x8x1xf32>
      tpu.vector_store %arg11[%c0_40, %c0_41, %c0_42], %46 {strides = array<i32>} : memref<4x8x1xf32, #tpu.memory_space<vmem>>, vector<4x8x1xf32>,
      %cst_43 = arith.constant 0.000000e+00 : f32
      %48 = vector.broadcast %cst_43 : f32 to vector<4x8x8xf32>
      %c0_44 = arith.constant 0 : index
      %c0_45 = arith.constant 0 : index
      %c0_46 = arith.constant 0 : index
      %49 = vector.load %arg12[%c0_44, %c0_45, %c0_46] : memref<4x8x8xf32, #tpu.memory_space<vmem>>, vector<4x8x8xf32>
      tpu.vector_store %arg12[%c0_44, %c0_45, %c0_46], %48 {strides = array<i32>} : memref<4x8x8xf32, #tpu.memory_space<vmem>>, vector<4x8x8xf32>,
    } else {
    }
    %c0 = arith.constant 0 : index
    %c0_1 = arith.constant 0 : index
    %c0_2 = arith.constant 0 : index
    %c0_3 = arith.constant 0 : index
    %7 = vector.load %arg4[%c0, %c0_1, %c0_2, %c0_3] : memref<1x4x8x8xbf16, #tpu.memory_space<vmem>>, vector<1x4x8x8xbf16>
    %8 = vector.shape_cast %7 : vector<1x4x8x8xbf16> to vector<4x8x8xbf16>
    %c0_4 = arith.constant 0 : index
    %c0_5 = arith.constant 0 : index
    %c0_6 = arith.constant 0 : index
    %c0_7 = arith.constant 0 : index
    %9 = vector.load %arg5[%c0_4, %c0_5, %c0_6, %c0_7] : memref<1x4x8x8xbf16, #tpu.memory_space<vmem>>, vector<1x4x8x8xbf16>
    %10 = vector.shape_cast %9 : vector<1x4x8x8xbf16> to vector<4x8x8xbf16>
    %c0_8 = arith.constant 0 : index
    %c0_9 = arith.constant 0 : index
    %c0_10 = arith.constant 0 : index
    %c0_11 = arith.constant 0 : index
    %11 = vector.load %arg6[%c0_8, %c0_9, %c0_10, %c0_11] : memref<1x4x8x8xbf16, #tpu.memory_space<vmem>>, vector<1x4x8x8xbf16>
    %12 = vector.shape_cast %11 : vector<1x4x8x8xbf16> to vector<4x8x8xbf16>
    "tpu.trace_start"() <{level = 10 : i32, message = "hqd,hkd->hqk"}> : () -> ()
    %cst = arith.constant dense<0.000000e+00> : vector<4x8x8xf32>
    %13 = tpu.matmul %8, %10, %cst {dimension_numbers = #tpu.dot_dimension_numbers<[2], [2], [1], [1], [0, 0, 0, 1, 1, 1], [0], [0]>} : vector<4x8x8xbf16>, vector<4x8x8xbf16>, vector<4x8x8xf32> -> vector<4x8x8xf32>
    "tpu.trace_stop"() : () -> ()
    %14 = arith.cmpi eq, %3, %1 : i32
    %15 = arith.extui %14 : i1 to i32
    %c0_i32_12 = arith.constant 0 : i32
    %16 = arith.cmpi ne, %15, %c0_i32_12 : i32
    %17 = scf.if %16 -> (vector<4x8x8xf32>) {
      %44 = tpu.iota {dimensions = array<i32: 1>} : vector<1x8x8xi32>
      %45 = tpu.iota {dimensions = array<i32: 2>} : vector<1x8x8xi32>
      %46 = arith.cmpi sgt, %45, %44 : vector<1x8x8xi32>
      %cst_35 = arith.constant -1.000000e+30 : f32
      %cst_36 = arith.constant 0.000000e+00 : f32
      %47 = vector.broadcast %cst_35 : f32 to vector<1x8x8xf32>
      %48 = vector.broadcast %cst_36 : f32 to vector<1x8x8xf32>
      %49 = arith.select %46, %47, %48 : vector<1x8x8xi1>, vector<1x8x8xf32>
      %50 = vector.broadcast %49 : vector<1x8x8xf32> to vector<4x8x8xf32>
      %51 = arith.addf %13, %50 : vector<4x8x8xf32>
      scf.yield %51 : vector<4x8x8xf32>
    } else {
      scf.yield %13 : vector<4x8x8xf32>
    }
    %c0_13 = arith.constant 0 : index
    %c0_14 = arith.constant 0 : index
    %c0_15 = arith.constant 0 : index
    %18 = vector.load %arg10[%c0_13, %c0_14, %c0_15] : memref<4x8x1xf32, #tpu.memory_space<vmem>>, vector<4x8x1xf32>
    %cst_16 = arith.constant dense<0xFF800000> : vector<4x8xf32>
    %19 = vector.multi_reduction <maximumf>, %17, %cst_16 [2] : vector<4x8x8xf32> to vector<4x8xf32>
    %20 = vector.shape_cast %19 : vector<4x8xf32> to vector<4x8x1xf32>
    %21 = arith.maximumf %18, %20 : vector<4x8x1xf32>
    %22 = arith.subf %18, %21 : vector<4x8x1xf32>
    %23 = math.exp %22 : vector<4x8x1xf32>
    %24 = vector.broadcast %21 : vector<4x8x1xf32> to vector<4x8x8xf32>
    %25 = arith.subf %17, %24 : vector<4x8x8xf32>
    %26 = math.exp %25 : vector<4x8x8xf32>
    %c0_17 = arith.constant 0 : index
    %c0_18 = arith.constant 0 : index
    %c0_19 = arith.constant 0 : index
    %27 = vector.load %arg11[%c0_17, %c0_18, %c0_19] : memref<4x8x1xf32, #tpu.memory_space<vmem>>, vector<4x8x1xf32>
    %28 = arith.mulf %23, %27 : vector<4x8x1xf32>
    %cst_20 = arith.constant dense<0.000000e+00> : vector<4x8xf32>
    %29 = vector.multi_reduction <add>, %26, %cst_20 [2] : vector<4x8x8xf32> to vector<4x8xf32>
    %30 = vector.shape_cast %29 : vector<4x8xf32> to vector<4x8x1xf32>
    %31 = arith.addf %28, %30 : vector<4x8x1xf32>
    %c0_21 = arith.constant 0 : index
    %c0_22 = arith.constant 0 : index
    %c0_23 = arith.constant 0 : index
    %32 = vector.load %arg11[%c0_21, %c0_22, %c0_23] : memref<4x8x1xf32, #tpu.memory_space<vmem>>, vector<4x8x1xf32>
    tpu.vector_store %arg11[%c0_21, %c0_22, %c0_23], %31 {strides = array<i32>} : memref<4x8x1xf32, #tpu.memory_space<vmem>>, vector<4x8x1xf32>,
    %c0_24 = arith.constant 0 : index
    %c0_25 = arith.constant 0 : index
    %c0_26 = arith.constant 0 : index
    %33 = vector.load %arg12[%c0_24, %c0_25, %c0_26] : memref<4x8x8xf32, #tpu.memory_space<vmem>>, vector<4x8x8xf32>
    %34 = vector.broadcast %23 : vector<4x8x1xf32> to vector<4x8x8xf32>
    %35 = arith.mulf %34, %33 : vector<4x8x8xf32>
    %36 = arith.truncf %26 : vector<4x8x8xf32> to vector<4x8x8xbf16>
    "tpu.trace_start"() <{level = 10 : i32, message = "hqk,hkd->hqd"}> : () -> ()
    %cst_27 = arith.constant dense<0.000000e+00> : vector<4x8x8xf32>
    %37 = tpu.matmul %36, %12, %cst_27 {dimension_numbers = #tpu.dot_dimension_numbers<[2], [1], [1], [2], [0, 0, 0, 1, 1, 2], [0], [0]>} : vector<4x8x8xbf16>, vector<4x8x8xbf16>, vector<4x8x8xf32> -> vector<4x8x8xf32>
    "tpu.trace_stop"() : () -> ()
    %38 = arith.addf %35, %37 : vector<4x8x8xf32>
    %c0_28 = arith.constant 0 : index
    %c0_29 = arith.constant 0 : index
    %c0_30 = arith.constant 0 : index
    %39 = vector.load %arg12[%c0_28, %c0_29, %c0_30] : memref<4x8x8xf32, #tpu.memory_space<vmem>>, vector<4x8x8xf32>
    tpu.vector_store %arg12[%c0_28, %c0_29, %c0_30], %38 {strides = array<i32>} : memref<4x8x8xf32, #tpu.memory_space<vmem>>, vector<4x8x8xf32>,
    %c0_31 = arith.constant 0 : index
    %c0_32 = arith.constant 0 : index
    %c0_33 = arith.constant 0 : index
    %40 = vector.load %arg10[%c0_31, %c0_32, %c0_33] : memref<4x8x1xf32, #tpu.memory_space<vmem>>, vector<4x8x1xf32>
    tpu.vector_store %arg10[%c0_31, %c0_32, %c0_33], %21 {strides = array<i32>} : memref<4x8x1xf32, #tpu.memory_space<vmem>>, vector<4x8x1xf32>,
    %41 = arith.cmpi eq, %3, %1 : i32
    %42 = arith.extui %41 : i1 to i32
    %c0_i32_34 = arith.constant 0 : i32
    %43 = arith.cmpi ne, %42, %c0_i32_34 : i32
    scf.if %43 {
      %c0_35 = arith.constant 0 : index
      %c0_36 = arith.constant 0 : index
      %c0_37 = arith.constant 0 : index
      %44 = vector.load %arg11[%c0_35, %c0_36, %c0_37] : memref<4x8x1xf32, #tpu.memory_space<vmem>>, vector<4x8x1xf32>
      %45 = tpu.reciprocal %44 {approx = true} : vector<4x8x1xf32> -> vector<4x8x1xf32>
      %c0_38 = arith.constant 0 : index
      %c0_39 = arith.constant 0 : index
      %c0_40 = arith.constant 0 : index
      %46 = vector.load %arg12[%c0_38, %c0_39, %c0_40] : memref<4x8x8xf32, #tpu.memory_space<vmem>>, vector<4x8x8xf32>
      %47 = vector.broadcast %45 : vector<4x8x1xf32> to vector<4x8x8xf32>
      %48 = arith.mulf %46, %47 : vector<4x8x8xf32>
      %49 = tpu.transpose %48, [1, 0, 2] : vector<4x8x8xf32> -> vector<8x4x8xf32>
      %50 = vector.shape_cast %49 : vector<8x4x8xf32> to vector<8x32xf32>
      %51 = arith.truncf %50 : vector<8x32xf32> to vector<8x32xbf16>
      %c0_41 = arith.constant 0 : index
      %c0_42 = arith.constant 0 : index
      %52 = vector.load %arg7[%c0_41, %c0_42] : memref<32x32xbf16, #tpu.memory_space<vmem>>, vector<32x32xbf16>
      %cst_43 = arith.constant dense<0.000000e+00> : vector<8x32xf32>
      %53 = tpu.matmul %51, %52, %cst_43 {dimension_numbers = #tpu.dot_dimension_numbers<[1], [0], [0], [1], [0, 0, 1, 1], [], []>} : vector<8x32xbf16>, vector<32x32xbf16>, vector<8x32xf32> -> vector<8x32xf32>
      %c0_44 = arith.constant 0 : index
      %c0_45 = arith.constant 0 : index
      %54 = vector.load %arg8[%c0_44, %c0_45] : memref<1x32xf32, #tpu.memory_space<vmem>>, vector<1x32xf32>
      %55 = vector.broadcast %54 : vector<1x32xf32> to vector<8x32xf32>
      %56 = arith.addf %53, %55 : vector<8x32xf32>
      %c0_46 = arith.constant 0 : index
      %c0_47 = arith.constant 0 : index
      %c0_48 = arith.constant 0 : index
      %57 = vector.load %arg9[%c0_46, %c0_47, %c0_48] : memref<1x8x32xf32, #tpu.memory_space<vmem>>, vector<1x8x32xf32>
      %58 = vector.shape_cast %57 : vector<1x8x32xf32> to vector<8x32xf32>
      %59 = vector.shape_cast %56 : vector<8x32xf32> to vector<1x8x32xf32>
      tpu.vector_store %arg9[%c0_46, %c0_47, %c0_48], %59 {strides = array<i32>} : memref<1x8x32xf32, #tpu.memory_space<vmem>>, vector<1x8x32xf32>,
    } else {
    }
    return
  }
  func.func @transform_0(%arg0: i32, %arg1: i32, %arg2: memref<1xi32, #tpu.memory_space<smem>>, %arg3: memref<1xi32, #tpu.memory_space<smem>>) -> (i32, i32, i32, i32) {
    %0 = arith.index_cast %arg1 : i32 to index
    %1 = memref.load %arg2[%0] : memref<1xi32, #tpu.memory_space<smem>>
    %c0_i32 = arith.constant 0 : i32
    %c0_i32_0 = arith.constant 0 : i32
    %c0_i32_1 = arith.constant 0 : i32
    return %arg0, %c0_i32, %1, %c0_i32_0 : i32, i32, i32, i32
  }
  func.func @transform_1(%arg0: i32, %arg1: i32, %arg2: memref<1xi32, #tpu.memory_space<smem>>, %arg3: memref<1xi32, #tpu.memory_space<smem>>) -> (i32, i32, i32, i32) {
    %0 = arith.index_cast %arg1 : i32 to index
    %1 = memref.load %arg3[%0] : memref<1xi32, #tpu.memory_space<smem>>
    %c0_i32 = arith.constant 0 : i32
    %c0_i32_0 = arith.constant 0 : i32
    %c0_i32_1 = arith.constant 0 : i32
    return %arg0, %c0_i32, %1, %c0_i32_0 : i32, i32, i32, i32
  }
  func.func @transform_2(%arg0: i32, %arg1: i32, %arg2: memref<1xi32, #tpu.memory_space<smem>>, %arg3: memref<1xi32, #tpu.memory_space<smem>>) -> (i32, i32, i32, i32) {
    %0 = arith.index_cast %arg1 : i32 to index
    %1 = memref.load %arg3[%0] : memref<1xi32, #tpu.memory_space<smem>>
    %c0_i32 = arith.constant 0 : i32
    %c0_i32_0 = arith.constant 0 : i32
    %c0_i32_1 = arith.constant 0 : i32
    return %arg0, %c0_i32, %1, %c0_i32_0 : i32, i32, i32, i32
  }
  func.func @transform_3(%arg0: i32, %arg1: i32, %arg2: memref<1xi32, #tpu.memory_space<smem>>, %arg3: memref<1xi32, #tpu.memory_space<smem>>) -> (i32, i32) {
    %c0_i32 = arith.constant 0 : i32
    %c0_i32_0 = arith.constant 0 : i32
    %c0_i32_1 = arith.constant 0 : i32
    return %c0_i32, %c0_i32_0 : i32, i32
  }
  func.func @transform_4(%arg0: i32, %arg1: i32, %arg2: memref<1xi32, #tpu.memory_space<smem>>, %arg3: memref<1xi32, #tpu.memory_space<smem>>) -> (i32, i32) {
    %c0_i32 = arith.constant 0 : i32
    %c0_i32_0 = arith.constant 0 : i32
    %c0_i32_1 = arith.constant 0 : i32
    return %c0_i32, %c0_i32_0 : i32, i32
  }
  func.func @transform_5(%arg0: i32, %arg1: i32, %arg2: memref<1xi32, #tpu.memory_space<smem>>, %arg3: memref<1xi32, #tpu.memory_space<smem>>) -> (i32, i32, i32) {
    %0 = arith.index_cast %arg1 : i32 to index
    %1 = memref.load %arg2[%0] : memref<1xi32, #tpu.memory_space<smem>>
    %c0_i32 = arith.constant 0 : i32
    %c0_i32_0 = arith.constant 0 : i32
    return %arg0, %1, %c0_i32 : i32, i32, i32
  }
}

</mosaic_0001>

<bundles_post_ra>
// kernel: multi_head_attention.1
= control target key start
LH: loop header
LB: loop body
LE: loop exit
PB: predicated region body
PF: predicated region fallthrough
CT: control target
= control target key end

     0   :  { %s1967_s0 = inlined_call_operand.<no memory space> [shape: s32[1], index: 0, kind: input, shape index: {}, may-alias: {0,1}]   ;;  %s1968_s1 = inlined_call_operand.<no memory space> [shape: s32[1], index: 1, kind: input, shape index: {}, may-alias: {0,1}]   ;;  %s1969_s2 = inlined_call_operand.vmem [shape: bf16[2,4,8,8], index: 2, kind: input, shape index: {}]   ;;  %s1970_s3 = inlined_call_operand.vmem [shape: bf16[2,4,8,8], index: 3, kind: input, shape index: {}]   ;;  %s1971_s4 = inlined_call_operand.vmem [shape: bf16[2,4,8,8], index: 4, kind: input, shape index: {}]   ;;  %s1972_s5 = inlined_call_operand.vmem [shape: bf16[32,32], index: 5, kind: input, shape index: {}]   ;;  %s1973_s6 = inlined_call_operand.vmem [shape: f32[1,32], index: 6, kind: input, shape index: {}]   ;;  %s1974_s7 = inlined_call_operand.hbm [shape: f32[2,8,32], index: 7, kind: output, shape index: {}]  }
   0x1   :  { %12 = sst [smem:[#allocation6]] %s1967_s0 }
   0x2   :  { %13 = sst [smem:[#allocation7]] %s1968_s1 }
   0x3   :  { %14 = vsyncpa [#allocation9], 0 }
   0x4   :  { %16 = vsyncpa [#allocation9 + $0x1], 0  ;;  %s1672_s28 = smov 0   ;;  %s1674_s29 = smov 0  }
   0x5   :  { %s1676_s30 = smov 0   ;;  %s1678_s8 = smov 0  }
   0x6   :  { %s1680_s9 = smov 0   ;;  %s1682_s10 = smov 0  }
   0x7 LB: > { %1979 = sst [smem:[#allocation11_spill]] %s1598_s30  ;;  %s1290_s0 = sadd.s32 4294967295, %s1610_s10   ;;  %s1610_s10 = sphi %s1682_s10, %s22_s10   ;;  %s1606_s9 = sphi %s1680_s9, %s1993_s9   ;;  %s1602_s8 = sphi %s1678_s8, %s1992_s8   ;;  %s1598_s30 = sphi %s1676_s30, %s1991_s30   ;;  %s1594_s29 = sphi %s1674_s29, %s1995_s29   ;;  %s1590_s28 = sphi %s1672_s28, %s1994_s28  }
   0x8   : > { %1980 = sst [smem:[#allocation12_spill]] %s1606_s9  ;;  %s1291_s1 = sadd.s32 4294967294, %s1610_s10  }
   0x9   : > { %s34_s11 = sadd.s32 1, %s1606_s9  ;;  %s177_s12 = sadd.s32 1, %s1598_s30 }
   0xa   : > { %p36_p0 = scmp.ge.s32.totalorder %s34_s11, 2  ;;  %p187_p1 = scmp.ne.s32.totalorder %s1598_s30, %s1594_s29 }
   0xb   : > { %p188_p2 = scmp.eq.s32.totalorder %s1290_s0, 1  ;;  %p193_p4 = scmp.ne.s32.totalorder %s1594_s29, %s1590_s28 }
   0xc   : > { %s1997_s11 = smov (%p36_p0, %s34_s11), 0  ;;  %p194_p5 = scmp.eq.s32.totalorder %s1291_s1, 1 }
   0xd   : > { %1981 = sst [smem:[#allocation13_spill]] %s1997_s11  ;;  %p1710_p3 = por %p188_p2, %p187_p1 }
   0xe   : > { %s172_s14 = ssub.s32 %s1606_s9, %s1997_s11  ;;  %p1294_p6 = scmp.ge.s32.totalorder %s1610_s10, 1 }
   0xf   : > { %p1719_p7 = por %p194_p5, %p193_p4  ;;  %p175_p8 = scmp.eq.s32.totalorder %s172_s14, 0 }
  0x10   : > { %p257_p9 = scmp.lt.s32.totalorder %s1610_s10, 3 }
  0x11   : > { %s1725_s16 = scalar_select %p175_p8, %s1598_s30, %s177_s12  }
  0x12   : > { %p258_p10 = pnand %p1294_p6, %p257_p9 }
  0x13   : > { %1984 = sst [smem:[#allocation14_spill]] %s1725_s16  ;;  %s1975_s17 = sand.u32 (!%p258_p10), 1, %s1594_s29  }
  0x14   : > { %261 = sbr.rel (%p258_p10) target bundleno = 1288 (0x508), region = 40  ;;  %s1728_s18 = sld [smem:[#allocation6]] (!%p258_p10) }
  0x15   : > { %s1732_s19 = sshll.u32 (!%p258_p10), %s1975_s17, 3  ;;  %p308_p11 = scmp.lt.s32.totalorder (!%p258_p10), %s1602_s8, 1 }
  0x16   : > { %s1735_s20 = sld [smem:[#allocation7]] (!%p258_p10) }
  0x1a   : > { %p310_p12 = scmp.lt.s32.totalorder (!%p258_p10), %s1728_s18, 0 }
  0x1b   : > { %s309_s21 = scalar_select %p308_p11, %s1602_s8, 1 }
  0x1c   : > { %s311_s23 = scalar_select %p310_p12, %s1728_s18, 0 }
  0x1d   : > { %s1296_s22 = sshll.u32 %s309_s21, 2  ;;  %p320_p13 = scmp.lt.s32.totalorder %s1735_s20, 0 }
  0x1e   : > { %s313_s24 = sadd.s32 %s1296_s22, %s311_s23  ;;  %s306_s23 = scalar_lea.vmem [#allocation8], %s1732_s19 }
  0x1f   : > { %s1297_s25 = sshll.u32 %s313_s24, 2  ;;  %p1302_p0 = scmp.ne.s32.totalorder %s1735_s20, 0 }
  0x20   : > { %s1744_s0 = scalar_lea.vmem %s1969_s2, %s1297_s25  ;;  %vm345_vm0 = vcmask (!%p1302_p0), 7168   ;;  %vm354_vm1 = vcmask (!%p1302_p0), 64512   ;;  %v1612_v0 = vmov (!%p1302_p0), -1e+30   ;;  %v1613_v1 = vmov (!%p1302_p0), 0.0  }
  0x21   : > { %s321_s1 = scalar_select %p320_p13, %s1735_s20, 0 }
  0x22   : > { %344 = sbr.rel (%p1302_p0) target bundleno = 41 (0x29), region = 44  ;;  %346 = vst.msk [vmem:[#allocation2] sm:$0xff] (!%p1302_p0), %vm345_vm0, %v1612_v0  ;;  %347 = vst.msk [vmem:[#allocation2 + $0x8] sm:$0xff] (!%p1302_p0), %vm345_vm0, %v1612_v0 }
  0x23   : > { %s323_s12 = sadd.s32 %s1296_s22, %s321_s1  ;;  %348 = vst.msk [vmem:[#allocation2 + $0x10] sm:$0xff] (!%p1302_p0), %vm345_vm0, %v1612_v0  ;;  %349 = vst.msk [vmem:[#allocation2 + $0x18] sm:$0xff] (!%p1302_p0), %vm345_vm0, %v1612_v0 }
  0x24   : > { %s1299_s14 = sshll.u32 %s323_s12, 2  ;;  %350 = vst.msk [vmem:[#allocation3] sm:$0xff] (!%p1302_p0), %vm345_vm0, %v1613_v1  ;;  %351 = vst.msk [vmem:[#allocation3 + $0x8] sm:$0xff] (!%p1302_p0), %vm345_vm0, %v1613_v1 }
  0x25   : > { %s1750_s9 = scalar_lea.vmem %s1970_s3, %s1299_s14  ;;  %s1755_s21 = scalar_lea.vmem %s1971_s4, %s1299_s14  ;;  %352 = vst.msk [vmem:[#allocation3 + $0x10] sm:$0xff] (!%p1302_p0), %vm345_vm0, %v1613_v1  ;;  %353 = vst.msk [vmem:[#allocation3 + $0x18] sm:$0xff] (!%p1302_p0), %vm345_vm0, %v1613_v1 }
  0x26   : > { %355 = vst.msk [vmem:[#allocation4] sm:$0xff] (!%p1302_p0), %vm354_vm1, %v1613_v1  ;;  %356 = vst.msk [vmem:[#allocation4 + $0x8] sm:$0xff] (!%p1302_p0), %vm354_vm1, %v1613_v1 }
  0x27   : > { %357 = vst.msk [vmem:[#allocation4 + $0x10] sm:$0xff] (!%p1302_p0), %vm354_vm1, %v1613_v1  ;;  %358 = vst.msk [vmem:[#allocation4 + $0x18] sm:$0xff] (!%p1302_p0), %vm354_vm1, %v1613_v1 }
  0x29 PF: > { %v363_v2 = vld [vmem:[%s1750_s9] sm:$0xf]  ;;  %vm371_vm2 = vcmask 64512   ;;  %v364_v3 = vld [vmem:[%s1750_s9 + $0x4] sm:$0xf]  ;;  %v1614_v4 = vmov 0.0   ;;  %v560_v15 = vlaneseq  ;;  %p556_p1 = scmp.eq.s32.totalorder %s1735_s20, %s1728_s18  ;;  %p1307_p2 = scmp.ne.s32.totalorder %s1735_s20, %s1728_s18 }
  0x2a   : > { %1342 = vmatprep.subr.bf16.mxu0 %v1614_v4  ;;  %v376_v5 = vsel %vm371_vm2, %v363_v2, 0  ;;  %1348 = vmatprep.subr.bf16.mxu1 %v1614_v4  ;;  %v422_v6 = vsel %vm371_vm2, %v364_v3, 0  ;;  %vm1615_vm3 = vmmov 0   ;;  %v365_v7 = vld [vmem:[%s1750_s9 + $0x8] sm:$0xf]  ;;  %v1616_v55 = vmov 0  }
  0x2b   : > { %1343 = vmatpush3.bf16.xpose.msra.mxu0 %v376_v5  ;;  %1349 = vmatpush3.bf16.xpose.msra.mxu1 %v422_v6  ;;  %v366_v8 = vld [vmem:[%s1750_s9 + $0xc] sm:$0xf]  ;;  %v359_v9 = vld [vmem:[%s1744_s0] sm:$0xf]  ;;  %v360_v10 = vld [vmem:[%s1744_s0 + $0x4] sm:$0xf] }
  0x2c   : > { %1344 = vmatprep.mubr.msk.bf16.mxu0 %vm1615_vm3, %v1614_v4  ;;  %1354 = vmatprep.subr.bf16.mxu0 %v1614_v4  ;;  %v468_v11 = vsel %vm371_vm2, %v365_v7, 0  ;;  %v514_v12 = vsel %vm371_vm2, %v366_v8, 0  ;;  %v361_v13 = vld [vmem:[%s1744_s0 + $0x8] sm:$0xf]  ;;  %v362_v14 = vld [vmem:[%s1744_s0 + $0xc] sm:$0xf] }
  0x2d   : > { %1350 = vmatprep.mubr.msk.bf16.mxu1 %vm1615_vm3, %v1614_v4  ;;  %1360 = vmatprep.subr.bf16.mxu1 %v1614_v4  ;;  %v1797_v16 = vshrl.u32 %v560_v15, 7  ;;  %v563_v17 = vand.u32 127, %v560_v15  ;;  %s1399_s30 = scalar_select %p556_p1, 1, 0  ;;  %v581_v56 = vld [vmem:[#allocation2] sm:$0xff]  ;;  %vm669_vm7 = vcmask 7168  }
  0x2e   : > { %s1416_s9 = scalar_select %p1307_p2, 1, 0  ;;  %1502 = vset.pattern.permute.xlu0 %v1616_v55  ;;  %1503 = vset.pattern.permute.xlu1 %v1616_v55  ;;  %v1838_v59 = vld [vmem:[#allocation2 + $0x8] sm:$0xff]  ;;  %v583_v0 = vld [vmem:[#allocation2 + $0x10] sm:$0xff]  ;;  %v1849_v5 = vld [vmem:[#allocation2 + $0x18] sm:$0xff]  ;;  %vm709_vm8 = vcmask 1043456  }
  0x2f   : > { %vm564_vm4 = vcmp.gt.s32.totalorder %v563_v17, %v1797_v16  ;;  %v1400_v18 = vstv %s1399_s30  ;;  %vm1621_vm9 = vmmov (!%p1307_p2), 0   ;;  %s1622_s20 = smov (!%p1307_p2), 16   ;;  %s1623_s22 = smov (!%p1307_p2), 8   ;;  %vm1091_vm10 = vcmask (!%p1307_p2), 130048  }
  0x30   : > { %v565_v19 = vsel %vm564_vm4, -1e+30, %v1614_v4  ;;  %v1417_v20 = vstv %s1416_s9  ;;  %vm1804_vm5 = vcmp.ne.s32.totalorder %v1400_v18, 0  ;;  %s1624_s24 = smov (!%p1307_p2), 24   ;;  %vm1093_vm11 = vcmask (!%p1307_p2), 195584  }
  0x31   : > { %vm1808_vm6 = vcmp.ne.s32.totalorder %v1417_v20, 0  ;;  %vm1119_vm12 = vcmask (!%p1307_p2), 261120  }
  0x32   : > { %1345 = vmatmul.mubr.msk.bf16.vlgmr.msra.gmra.mrb[0].mxu0 %vm371_vm2, %v359_v9  ;;  %1351 = vmatmul.mubr.msk.bf16.vlgmr.msra.gmra.mrb[0].mxu1 %vm371_vm2, %v360_v10  ;;  %v367_v10 = vld [vmem:[%s1755_s21] sm:$0xf] }
  0x33   : > { %1355 = vmatpush3.bf16.xpose.msra.mxu0 %v468_v11  ;;  %1361 = vmatpush3.bf16.xpose.msra.mxu1 %v514_v12  ;;  %v711_v11 = vsel %vm709_vm8, %v367_v10, 0 }
  0x34   : > { %1356 = vmatprep.mubr.msk.bf16.mxu0 %vm1615_vm3, %v1614_v4  ;;  %1362 = vmatprep.mubr.msk.bf16.mxu1 %vm1615_vm3, %v1614_v4 }
  0x35   : > { %1366 = vmatprep.subr.bf16.mxu0 %v1614_v4  ;;  %1372 = vmatprep.subr.bf16.mxu1 %v1614_v4 }
  0x3a   : > { %1357 = vmatmul.mubr.msk.bf16.vlgmr.msra.gmra.mrb[4].mxu0 %vm371_vm2, %v361_v13  ;;  %1363 = vmatmul.mubr.msk.bf16.vlgmr.msra.gmra.mrb[4].mxu1 %vm371_vm2, %v362_v14  ;;  %v368_v13 = vld [vmem:[%s1755_s21 + $0x4] sm:$0xf] }
  0x3b   : > { %1368 = vmatprep.mubr.msk.bf16.mxu0 %vm1615_vm3, %v1614_v4  ;;  %1374 = vmatprep.mubr.msk.bf16.mxu1 %vm1615_vm3, %v1614_v4  ;;  %v757_v14 = vsel %vm709_vm8, %v368_v13, 0 }
  0x3c   : > { %1367 = vmatpush3.bf16.msra.mxu0 %v711_v11  ;;  %1373 = vmatpush3.bf16.msra.mxu1 %v757_v14  ;;  %v676_v14 = vld [vmem:[#allocation4 + $0x10] sm:$0xff] }
  0x3d   : > { %1378 = vmatprep.subr.bf16.mxu0 %v1614_v4  ;;  %1384 = vmatprep.subr.bf16.mxu1 %v1614_v4 }
 0x105   : > { %v412_v21 = vpop.f32.mrb[0].mxu0  ;;  %v458_v22 = vpop.f32.mrb[0].mxu1 }
 0x106   : > { %v566_v24 = vadd.f32 %v565_v19, %v412_v21  ;;  %v1346_v25 = vpop.f32.mrb[1].mxu0  ;;  %v567_v26 = vadd.f32 %v565_v19, %v458_v22  ;;  %v1352_v27 = vpop.f32.mrb[1].mxu1 }
 0x107   : > { %v415_v29 = vpop.f32.mrb[2].mxu0  ;;  %v461_v30 = vpop.f32.mrb[2].mxu1  ;;  %v369_v27 = vld [vmem:[%s1755_s21 + $0x8] sm:$0xf] }
 0x108   : > { %v1347_v31 = vpop.f32.mrb[3].mxu0  ;;  %v1353_v32 = vpop.f32.mrb[3].mxu1  ;;  %v1402_v33 = vsel %vm1804_vm5, %v566_v24, 0  ;;  %v1406_v34 = vsel %vm1804_vm5, %v567_v26, 0 }
 0x109   : > { %v1818_v35 = vsel %vm1808_vm6, %v412_v21, %v1402_v33  ;;  %v1824_v37 = vsel %vm1808_vm6, %v458_v22, %v1406_v34  ;;  %v803_v32 = vsel %vm709_vm8, %v369_v27, 0  ;;  %v370_v33 = vld [vmem:[%s1755_s21 + $0xc] sm:$0xf] }
 0x10a   : > { %v585_v36 = vsel %vm371_vm2, %v1818_v35, -inf  ;;  %v588_v43 = vsel %vm371_vm2, %v1824_v37, -inf }
 0x10b   : > { %586 = vmax.xlane.f32.xlu0 %v585_v36 }
 0x10d   : > { %v504_v38 = vpop.f32.mrb[4].mxu0  ;;  %v550_v39 = vpop.f32.mrb[4].mxu1 }
 0x10e   : > { %v568_v40 = vadd.f32 %v565_v19, %v504_v38  ;;  %v1358_v41 = vpop.f32.mrb[5].mxu0  ;;  %v569_v42 = vadd.f32 %v565_v19, %v550_v39  ;;  %v1364_v44 = vpop.f32.mrb[5].mxu1 }
 0x10f   : > { %589 = vmax.xlane.f32.xlu0 %v588_v43  ;;  %v507_v45 = vpop.f32.mrb[6].mxu0  ;;  %v553_v46 = vpop.f32.mrb[6].mxu1 }
 0x110   : > { %v1359_v47 = vpop.f32.mrb[7].mxu0  ;;  %v1365_v48 = vpop.f32.mrb[7].mxu1  ;;  %v1410_v49 = vsel %vm1804_vm5, %v568_v40, 0  ;;  %v1414_v50 = vsel %vm1804_vm5, %v569_v42, 0 }
 0x111   : > { %v1427_v51 = vsel %vm1808_vm6, %v504_v38, %v1410_v49  ;;  %v1431_v53 = vsel %vm1808_vm6, %v550_v39, %v1414_v50  ;;  %v849_v38 = vsel %vm709_vm8, %v370_v33, 0  ;;  %v645_v50 = vld [vmem:[#allocation3] sm:$0xff] }
 0x112   : > { %v591_v52 = vsel %vm371_vm2, %v1427_v51, -inf  ;;  %v594_v54 = vsel %vm371_vm2, %v1431_v53, -inf }
 0x113   : > { %592 = vmax.xlane.f32.xlu1 %v591_v52 }
 0x117   : > { %595 = vmax.xlane.f32.xlu1 %v594_v54 }
 0x198   : > { %v587_v57 = vpop.xlane.xlu0 %586 }
 0x199   : > { %v597_v58 = vmax.f32 %v581_v56, %v587_v57 }
 0x19b   : > { %v601_v60 = vsub.f32 %v581_v56, %v597_v58  ;;  %899 = vst.msk [vmem:[#allocation2] sm:$0xff] %vm669_vm7, %v597_v58  ;;  %615 = vperm.xlu0 %1502, %v597_v58  }
 0x19c   : > { %v590_v61 = vpop.xlane.xlu0 %589 }
 0x19d   : > { %v605_v62 = vmul.f32 1.442695, %v601_v60  ;;  %v1842_v63 = vmax.f32 %v1838_v59, %v590_v61 }
 0x19f   : > { %1504 = vpow2.f32 %v605_v62  ;;  %v602_v1 = vsub.f32 %v1838_v59, %v1842_v63  ;;  %900 = vst.msk [vmem:[#allocation2 + $0x8] sm:$0xff] %vm669_vm7, %v1842_v63  ;;  %620 = vperm.xlu1 %1503, %v1842_v63   ;;  %v647_v59 = vld [vmem:[#allocation3 + $0x10] sm:$0xff]  ;;  %v648_v62 = vld [vmem:[#allocation3 + $0x18] sm:$0xff] }
 0x1a0   : > { %v593_v2 = vpop.xlane.xlu1 %592 }
 0x1a1   : > { %v599_v3 = vmax.f32 %v583_v0, %v593_v2  ;;  %v607_v42 = vmul.f32 1.442695, %v602_v1 }
 0x1a3   : > { %v603_v6 = vsub.f32 %v583_v0, %v599_v3  ;;  %901 = vst.msk [vmem:[#allocation2 + $0x10] sm:$0xff] %vm669_vm7, %v599_v3  ;;  %625 = vperm.xlu1 %1503, %v599_v3   ;;  %v674_v3 = vld [vmem:[#allocation4] sm:$0xff] }
 0x1a4   : > { %v596_v7 = vpop.xlane.xlu1 %595 }
 0x1a5   : > { %v1853_v8 = vmax.f32 %v1849_v5, %v596_v7 }
 0x1a7   : > { %v604_v9 = vsub.f32 %v1849_v5, %v1853_v8  ;;  %902 = vst.msk [vmem:[#allocation2 + $0x18] sm:$0xff] %vm669_vm7, %v1853_v8  ;;  %630 = vperm.xlu1 %1503, %v1853_v8  }
 0x1a9   : > { %v1862_v12 = vpop.eup %1504  ;;  %v611_v47 = vmul.f32 1.442695, %v604_v9 }
 0x1ab   : > { %680 = vperm.xlu1 %1503, %v1862_v12  }
 0x21a   : > { %v616_v15 = vpop.permute.xlu0 %615 }
 0x21b   : > { %v633_v17 = vsub.f32 %v1818_v35, %v616_v15  ;;  %v609_v35 = vmul.f32 1.442695, %v603_v6  ;;  %v675_v6 = vld [vmem:[#allocation4 + $0x8] sm:$0xff] }
 0x21d   : > { %v637_v18 = vmul.f32 1.442695, %v633_v17 }
 0x21e   : > { %v621_v19 = vpop.permute.xlu1 %620 }
 0x21f   : > { %1506 = vpow2.f32 %v637_v18  ;;  %v634_v20 = vsub.f32 %v1824_v37, %v621_v19 }
 0x221   : > { %v639_v21 = vmul.f32 1.442695, %v634_v20 }
 0x222   : > { %v626_v22 = vpop.permute.xlu1 %625 }
 0x223   : > { %1508 = vpow2.f32 %v639_v21  ;;  %v635_v23 = vsub.f32 %v1427_v51, %v626_v22  ;;  %v649_v51 = vmul.f32 %v1862_v12, %v645_v50  ;;  %v677_v22 = vld [vmem:[#allocation4 + $0x18] sm:$0xff]  ;;  %v1620_v50 = vmov (!%p1307_p2), 1934713408  }
 0x225   : > { %v641_v24 = vmul.f32 1.442695, %v635_v23 }
 0x226   : > { %v631_v25 = vpop.permute.xlu1 %630 }
 0x227   : > { %1510 = vpow2.f32 %v641_v24  ;;  %v636_v26 = vsub.f32 %v1431_v53, %v631_v25  ;;  %v646_v53 = vld [vmem:[#allocation3 + $0x8] sm:$0xff] }
 0x229   : > { %v1507_v28 = vpop.eup %1506  ;;  %v643_v29 = vmul.f32 1.442695, %v636_v26 }
 0x22a   : > { %v653_v30 = vsel %vm371_vm2, %v1507_v28, 0.0  ;;  %v702_v31 = vpack.c.bf16 %v1507_v28, %v1507_v28  ;;  %v681_v49 = vpop.permute.xlu1 %680 }
 0x22b   : > { %1512 = vpow2.f32 %v643_v29  ;;  %654 = vadd.xlane.f32.xlu1 %v653_v30  ;;  %v698_v5 = vmul.f32 %v681_v49, %v674_v3 }
 0x22c   : > { %1369 = vmatmul.mubr.msk.bf16.vlgmr.msra.gmra.mrb[8].mxu0 %vm371_vm2, %v702_v31  ;;  %1514 = vpow2.f32 %v609_v35 }
 0x22d   : > { %v1509_v34 = vpop.eup %1508  ;;  %1379 = vmatpush3.bf16.msra.mxu0 %v803_v32  ;;  %1380 = vmatprep.mubr.msk.bf16.mxu0 %vm1615_vm3, %v1614_v4  ;;  %1516 = vpow2.f32 %v607_v42 }
 0x22e   : > { %v656_v36 = vsel %vm371_vm2, %v1509_v34, 0.0  ;;  %v703_v37 = vpack.c.bf16 %v1509_v34, %v1509_v34  ;;  %1518 = vpow2.f32 %v611_v47 }
 0x22f   : > { %657 = vadd.xlane.f32.xlu0 %v656_v36 }
 0x230   : > { %1375 = vmatmul.mubr.msk.bf16.vlgmr.msra.gmra.mrb[8].mxu1 %vm371_vm2, %v703_v37 }
 0x231   : > { %v1511_v39 = vpop.eup %1510  ;;  %1385 = vmatpush3.bf16.msra.mxu1 %v849_v38  ;;  %1386 = vmatprep.mubr.msk.bf16.mxu1 %vm1615_vm3, %v1614_v4  ;;  %v1617_v38 = vmov (!%p1307_p2), 0  }
 0x232   : > { %v704_v40 = vpack.c.bf16 %v1511_v39, %v1511_v39  ;;  %v659_v46 = vsel %vm371_vm2, %v1511_v39, 0.0 }
 0x234   : > { %1381 = vmatmul.mubr.msk.bf16.vlgmr.msra.gmra.mrb[12].mxu0 %vm371_vm2, %v704_v40 }
 0x235   : > { %v1513_v41 = vpop.eup %1512 }
 0x236   : > { %v705_v43 = vpack.c.bf16 %v1513_v41, %v1513_v41  ;;  %v1515_v44 = vpop.eup %1514  ;;  %v662_v4 = vsel %vm371_vm2, %v1513_v41, 0.0 }
 0x237   : > { %v1517_v45 = vpop.eup %1516  ;;  %v651_v60 = vmul.f32 %v1515_v44, %v647_v59 }
 0x238   : > { %1387 = vmatmul.mubr.msk.bf16.vlgmr.msra.gmra.mrb[12].mxu1 %vm371_vm2, %v705_v43  ;;  %v1519_v48 = vpop.eup %1518  ;;  %v650_v55 = vmul.f32 %v1517_v45, %v646_v53 }
 0x239   : > { %v652_v0 = vmul.f32 %v1519_v48, %v648_v62 }
 0x23c   : > { %690 = vperm.xlu1 %1503, %v1515_v44   ;;  %v1618_v44 = vmov (!%p1307_p2), 0.0  }
 0x23d   : > { %1390 = vmatprep.subr.bf16.mxu0 (!%p1307_p2), %v1618_v44  ;;  %1394 = vmatprep.mubr.msk.bf16.mxu0 (!%p1307_p2), %vm1621_vm9, %v1618_v44 }
 0x245   : > { %685 = vperm.xlu0 %1502, %v1517_v45   ;;  %v1619_v45 = vmov (!%p1307_p2), 1983009808  }
 0x249   : > { %1520 = vset.pattern.permute.xlu0 (!%p1307_p2), %v1617_v38 }
 0x260   : > { %660 = vadd.xlane.f32.xlu1 %v659_v46  ;;  %v945_v46 = vunpack.c.l.s4 (!%p1307_p2), %v1619_v45 }
 0x262   : > { %v946_v53 = vunpack.c.0.s8 (!%p1307_p2), %v945_v46  ;;  %v1315_v46 = vld [vmem:[%s1973_s6] ss:$0 sm:$0xff] (!%p1307_p2) }
 0x264   : > { %663 = vadd.xlane.f32.xlu1 %v662_v4 }
 0x275   : > { %695 = vperm.xlu1 %1503, %v1519_v48  }
 0x279   : > { %1521 = vset.pattern.permute.xlu1 (!%p1307_p2), %v1617_v38 }
 0x2b8   : > { %v655_v52 = vpop.xlane.xlu1 %654 }
 0x2b9   : > { %v665_v54 = vadd.f32 %v655_v52, %v649_v51  ;;  %v977_v51 = vunpack.c.l.s4 (!%p1307_p2), %v1620_v50 }
 0x2bb   : > { %670 = vst.msk [vmem:[#allocation3] sm:$0xff] %vm669_vm7, %v665_v54  ;;  %v978_v59 = vunpack.c.0.s8 (!%p1307_p2), %v977_v51 }
 0x2bc   : > { %v658_v56 = vpop.xlane.xlu0 %657  ;;  %v691_v58 = vpop.permute.xlu1 %690 }
 0x2bd   : > { %v666_v57 = vadd.f32 %v658_v56, %v650_v55  ;;  %v700_v20 = vmul.f32 %v691_v58, %v676_v14  ;;  %v981_v3 = vsub.s32 (!%p1307_p2), %v978_v59, %v1797_v16 }
 0x2bf   : > { %671 = vst.msk [vmem:[#allocation3 + $0x8] sm:$0xff] %vm669_vm7, %v666_v57 }
 0x2c2   : > { %v906_v36 = vld [vmem:[#allocation3] sm:$0xff] (!%p1307_p2) }
 0x2c4   : > { %v686_v7 = vpop.permute.xlu0 %685 }
 0x2c5   : > { %v699_v12 = vmul.f32 %v686_v7, %v675_v6 }
 0x2c6   : > { %v907_v39 = vld [vmem:[#allocation3 + $0x8] sm:$0xff] (!%p1307_p2) }
 0x2ed   : > { %v661_v61 = vpop.xlane.xlu1 %660 }
 0x2ee   : > { %v667_v63 = vadd.f32 %v661_v61, %v651_v60  ;;  %v949_v61 = vsub.s32 (!%p1307_p2), %v946_v53, %v1797_v16  ;;  %v1523_v16 = vld [vmem:[%s1972_s5 + $0x8] sm:$0xff] (!%p1307_p2)  }
 0x2f0   : > { %672 = vst.msk [vmem:[#allocation3 + $0x10] sm:$0xff] %vm669_vm7, %v667_v63 }
 0x2f1   : > { %v664_v1 = vpop.xlane.xlu1 %663 }
 0x2f2   : > { %v668_v2 = vadd.f32 %v664_v1, %v652_v0 }
 0x2f4   : > { %673 = vst.msk [vmem:[#allocation3 + $0x18] sm:$0xff] %vm669_vm7, %v668_v2 }
 0x2f5   : > { %v696_v23 = vpop.permute.xlu1 %695 }
 0x2f6   : > { %v701_v28 = vmul.f32 %v696_v23, %v677_v22 }
 0x2f7   : > { %v908_v35 = vld [vmem:[#allocation3 + $0x10] sm:$0xff] (!%p1307_p2) }
 0x2f8   : > { %1524 = vrcp.f32 (!%p1307_p2), %v908_v35 }
 0x2f9   : > { %1526 = vrcp.f32 (!%p1307_p2), %v906_v36 }
 0x2fb   : > { %v909_v37 = vld [vmem:[#allocation3 + $0x18] sm:$0xff] (!%p1307_p2) }
 0x2fc   : > { %1528 = vrcp.f32 (!%p1307_p2), %v909_v37 }
 0x2fd   : > { %1530 = vrcp.f32 (!%p1307_p2), %v907_v39 }
 0x2ff   : > { %v747_v8 = vpop.f32.mrb[8].mxu0 }
 0x300   : > { %v891_v9 = vadd.f32 %v747_v8, %v698_v5  ;;  %v1370_v10 = vpop.f32.mrb[9].mxu0 }
 0x301   : > { %v750_v11 = vpop.f32.mrb[10].mxu0 }
 0x302   : > { %895 = vst.msk [vmem:[#allocation4] sm:$0xff] %vm371_vm2, %v891_v9  ;;  %v1371_v13 = vpop.f32.mrb[11].mxu0  ;;  %v1525_v40 = vpop.eup (!%p1307_p2), %1524  ;;  %v1522_v9 = vld [vmem:[%s1972_s5] sm:$0xff] (!%p1307_p2)  }
 0x303   : > { %v793_v15 = vpop.f32.mrb[8].mxu1  ;;  %v1527_v41 = vpop.eup (!%p1307_p2), %1526  ;;  %930 = vperm.xlu1 (!%p1307_p2), %1521, %v1525_v40   ;;  %1391 = vmatpush3.bf16.msra.mxu0 (!%p1307_p2), %v1522_v9 }
 0x304   : > { %v892_v17 = vadd.f32 %v793_v15, %v699_v12  ;;  %v1376_v18 = vpop.f32.mrb[9].mxu1  ;;  %920 = vperm.xlu0 (!%p1307_p2), %1520, %v1527_v41   ;;  %1392 = vmatprep.subr.bf16.mxu0 (!%p1307_p2), %v1618_v44 }
 0x305   : > { %v796_v19 = vpop.f32.mrb[10].mxu1 }
 0x306   : > { %896 = vst.msk [vmem:[#allocation4 + $0x8] sm:$0xff] %vm371_vm2, %v892_v17  ;;  %v1377_v21 = vpop.f32.mrb[11].mxu1  ;;  %v1529_v42 = vpop.eup (!%p1307_p2), %1528 }
 0x307   : > { %v839_v24 = vpop.f32.mrb[12].mxu0  ;;  %v1531_v43 = vpop.eup (!%p1307_p2), %1530  ;;  %935 = vperm.xlu1 (!%p1307_p2), %1521, %v1529_v42   ;;  %1393 = vmatpush3.bf16.msra.mxu0 (!%p1307_p2), %v1523_v16 }
 0x308   : > { %v893_v25 = vadd.f32 %v839_v24, %v700_v20  ;;  %v1382_v26 = vpop.f32.mrb[13].mxu0  ;;  %905 = sbr.rel (%p1307_p2) target bundleno = 1261 (0x4ed), region = 56  ;;  %925 = vperm.xlu0 (!%p1307_p2), %1520, %v1531_v43  }
 0x309   : > { %v842_v27 = vpop.f32.mrb[14].mxu0  ;;  %v914_v47 = vld [vmem:[#allocation4] sm:$0xff] (!%p1307_p2) }
 0x30a   : > { %897 = vst.msk [vmem:[#allocation4 + $0x10] sm:$0xff] %vm371_vm2, %v893_v25  ;;  %v1383_v29 = vpop.f32.mrb[15].mxu0 }
 0x30b   : > { %v885_v30 = vpop.f32.mrb[12].mxu1 }
 0x30c   : > { %v894_v31 = vadd.f32 %v885_v30, %v701_v28  ;;  %v1388_v32 = vpop.f32.mrb[13].mxu1 }
 0x30d   : > { %v888_v33 = vpop.f32.mrb[14].mxu1  ;;  %v915_v56 = vld [vmem:[#allocation4 + $0x8] sm:$0xff] (!%p1307_p2) }
 0x30e   : > { %898 = vst.msk [vmem:[#allocation4 + $0x18] sm:$0xff] %vm371_vm2, %v894_v31  ;;  %v1389_v34 = vpop.f32.mrb[15].mxu1 }
 0x311   : > { %v916_v4 = vld [vmem:[#allocation4 + $0x10] sm:$0xff] }
 0x315   : > { %v917_v55 = vld [vmem:[#allocation4 + $0x18] sm:$0xff] }
 0x382   : > { %v931_v48 = vpop.permute.xlu1 %930 }
 0x383   : > { %v921_v49 = vpop.permute.xlu0 %920  ;;  %v940_v52 = vmul.f32 %v931_v48, %v916_v4 }
 0x384   : > { %v938_v54 = vmul.f32 %v921_v49, %v914_v47 }
 0x386   : > { %v936_v57 = vpop.permute.xlu1 %935  ;;  %v942_v62 = vcombine.low %v938_v54, %v940_v52  ;;  %v943_v63 = vcombine.high %v938_v54, %v940_v52 }
 0x387   : > { %v941_v58 = vmul.f32 %v936_v57, %v917_v55  ;;  %v926_v60 = vpop.permute.xlu0 %925 }
 0x388   : > { %v939_v0 = vmul.f32 %v926_v60, %v915_v56  ;;  %v950_v5 = vrot.slane %v942_v62, %v949_v61  ;;  %v957_v6 = vrot.slane %v943_v63, %v949_v61 }
 0x38a   : > { %v958_v1 = vcombine.low %v939_v0, %v941_v58  ;;  %v959_v2 = vcombine.high %v939_v0, %v941_v58 }
 0x38c   : > { %v966_v7 = vrot.slane %v958_v1, %v949_v61  ;;  %v973_v8 = vrot.slane %v959_v2, %v949_v61 }
 0x38e   : > { %v974_v10 = vcombine.low %v950_v5, %v966_v7  ;;  %v975_v11 = vcombine.high %v950_v5, %v966_v7  ;;  %v990_v12 = vcombine.low %v957_v6, %v973_v8  ;;  %v991_v13 = vcombine.high %v957_v6, %v973_v8 }
 0x390   : > { %v982_v14 = vrot.slane %v974_v10, %v981_v3  ;;  %v989_v15 = vrot.slane %v975_v11, %v981_v3  ;;  %v998_v17 = vrot.slane %v990_v12, %v981_v3  ;;  %v1005_v18 = vrot.slane %v991_v13, %v981_v3 }
 0x392   : > { %v1010_v19 = vcombine.low %v982_v14, %v989_v15  ;;  %v1313_v20 = vcombine.high %v982_v14, %v989_v15  ;;  %v1026_v21 = vcombine.low %v998_v17, %v1005_v18  ;;  %v1314_v22 = vcombine.high %v998_v17, %v1005_v18 }
 0x394   : > { %v1017_v23 = vrot.slane %v1010_v19, %v949_v61  ;;  %v1025_v24 = vrot.slane %v1313_v20, %v949_v61  ;;  %v1033_v25 = vrot.slane %v1026_v21, %v949_v61  ;;  %v1041_v26 = vrot.slane %v1314_v22, %v949_v61 }
 0x396   : > { %v1043_v27 = vcombine.high %v1017_v23, %v1025_v24  ;;  %v1059_v28 = vcombine.high %v1033_v25, %v1041_v26  ;;  %v1042_v29 = vcombine.low %v1017_v23, %v1025_v24  ;;  %v1058_v30 = vcombine.low %v1033_v25, %v1041_v26 }
 0x398   : > { %v1057_v31 = vrot.slane %v1043_v27, %v981_v3  ;;  %v1073_v32 = vrot.slane %v1059_v28, %v981_v3  ;;  %v1050_v33 = vrot.slane %v1042_v29, %v981_v3  ;;  %v1066_v34 = vrot.slane %v1058_v30, %v981_v3 }
 0x39a   : > { %v1076_v35 = vcombine.low %v1057_v31, %v1073_v32  ;;  %v1075_v36 = vcombine.high %v1050_v33, %v1066_v34  ;;  %v1074_v37 = vcombine.low %v1050_v33, %v1066_v34  ;;  %v1077_v38 = vcombine.high %v1057_v31, %v1073_v32 }
 0x39c   : > { %1083 = vrot.lane.b32.xlu1 %v1076_v35, %s1622_s20  ;;  %1079 = vrot.lane.b32.xlu0 %v1075_v36, %s1623_s22 }
 0x3a0   : > { %1087 = vrot.lane.b32.xlu0 %v1077_v38, %s1624_s24 }
 0x40e   : > { %v1080_v39 = vpop.permute.xlu0 %1079  ;;  %v1084_v40 = vpop.permute.xlu1 %1083 }
 0x40f   : > { %v1090_v41 = vsel %vm371_vm2, %v1074_v37, %v1080_v39 }
 0x410   : > { %v1092_v42 = vsel %vm1091_vm10, %v1090_v41, %v1084_v40 }
 0x412   : > { %v1088_v43 = vpop.permute.xlu0 %1087 }
 0x413   : > { %v1094_v44 = vsel %vm1093_vm11, %v1092_v42, %v1088_v43 }
 0x414   : > { %v1095_v45 = vpack.c.bf16 %v1094_v44, %v1094_v44 }
 0x416   : > { %1395 = vmatmul.mubr.msk.bf16.vlgmr.msra.gmra.mrb[0].mxu0 %vm1119_vm12, %v1095_v45 }
 0x4e9   : > { %v1157_v4 = vpop.f32.mrb[0].mxu0 }
 0x4ea   : > { %v1158_v47 = vadd.f32 %v1315_v46, %v1157_v4  ;;  %v1396_v48 = vpop.f32.mrb[1].mxu0 }
 0x4eb   : > { %v1160_v49 = vpop.f32.mrb[2].mxu0 }
 0x4ec   : > { %1163 = vst.msk [vmem:[%s306_s23] sm:$0xff] %vm1119_vm12, %v1158_v47  ;;  %v1397_v50 = vpop.f32.mrb[3].mxu0 }
 0x4ed PF: > { %s1172_s27 = sld [smem:[#allocation6]]  ;;  %s1180_s0 = sshll.u32 %s306_s23, 4  ;;  %s1922_s0 = int_to_ptr.vmem [resolvable:$true] %s1180_s0 }
 0x4ee   : > { %s1989_s9 = sand.u32 1, %s1594_s29   ;;  %s1532_s16 = scalar_lea.vmem %s1922_s0, 128 }
 0x4ef   : > { %s1165_s11 = scalar_lea.sflag [#allocation9], %s1989_s9  ;;  %p1533_p4 = scmp.ne.s32.totalorder %s1922_s0, %s1532_s16 }
 0x4f0   : > { %s1625_s19 = smov [#allocation8]  }
 0x4f1   : > { %p1534_p5 = pnand %p1533_p4, %p1710_p3  ;;  %s1536_s23 = sshll.u32 %s1625_s19, 4  ;;  %s1537_s23 = int_to_ptr.vmem [resolvable:$false] %s1536_s23 }
 0x4f2   : > { %p1539_p8 = scmp.lt.s32.totalorder %s1922_s0, %s1537_s23 }
 0x4f3   : > { %s1176_s1 = sadd.s32 %s1602_s8, %s1172_s27  ;;  %p1535_p6 = pneg %p1534_p5 }
 0x4f4   : > { %s1320_s12 = sshll.u32 %s1176_s1, 7  ;;  %s1538_s8 = scalar_lea.vmem %s1537_s23, 256 }
 0x4f5   : > { %s1178_s30 = scalar_lea.hbm %s1974_s7, %s1320_s12  ;;  %p1540_p9 = scmp.lt.s32.totalorder %s1538_s8, %s1532_s16 }
 0x4f7   : > { %p1541_p10 = por %p1540_p9, %p1539_p8 }
 0x4f9   : > { %p1542_p11 = pnand %p1541_p10, %p1535_p6 }
 0x4fb   : > { %1545 = shalt.err (!%p1542_p11)
}
 0x4fc   : > { %s1546_s17 = scalar_lea.hbm %s1178_s30, 128  ;;  %s1550_s22 = scalar_lea.hbm %s1974_s7, 256 }
 0x4fd   : > { %p1547_p12 = scmp.ne.s32.totalorder %s1178_s30, %s1546_s17  ;;  %p1551_p1 = scmp.lt.u32.totalorder %s1178_s30, %s1974_s7 }
 0x4fe   : > { %p1552_p2 = scmp.lt.u32.totalorder %s1550_s22, %s1546_s17  ;;  %p1554_p5 = scmp.lt.u32.totalorder %s1546_s17, %s1178_s30 }
 0x4ff   : > { %p1548_p13 = pnand %p1547_p12, %p1710_p3 }
 0x500   : > { %p1553_p4 = por %p1552_p2, %p1551_p1 }
 0x501   : > { %p1549_p0 = pneg %p1548_p13 }
 0x502   : > { %p1555_p8 = por %p1554_p5, %p1553_p4 }
 0x504   : > { %p1556_p6 = pnand %p1555_p8, %p1549_p0 }
 0x506   : > { %1559 = shalt.err (!%p1556_p6)
}
 0x507   : > { %1432 = dma.vmem_to_hbm [thread:$0]  (%p1710_p3), %s1922_s0, 128, %s1178_s30, %s1165_s11  }
 0x508 PF: > { %p1440_p9 = scmp.ge.s32.totalorder %s1610_s10, 2  ;;  %s1192_s26 = sand.u32 1, %s1590_s28  }
 0x509   : > { %s1193_s27 = scalar_lea.sflag [#allocation9], %s1192_s26 }
 0x50a   : > { %p1435_p10 = pnand %p1440_p9, %p1719_p7 }
 0x50c   : > { %1585 = dma.done.wait (!%p1435_p10), %s1193_s27, 128  }
 0x50d   : > { %1587 = vsyncadd (!%p1435_p10), %s1193_s27, 4294967168  ;;  %s22_s10 = sadd.s32 1, %s1610_s10   ;;  %s1990_s1 = sld [smem:[#allocation11_spill]] }
 0x50e   : > { %p19_p11 = scmp.ge.s32.totalorder %s22_s10, 4   ;;  %s1991_s30 = sld [smem:[#allocation14_spill]] }
 0x50f   : > { %s1992_s8 = sld [smem:[#allocation12_spill]]  ;;  %s1993_s9 = sld [smem:[#allocation13_spill]] }
 0x510   : > { %s1994_s28 = smov %s1594_s29  ;;  %21 = sbr.rel (!%p19_p11) target bundleno = 7 (0x7), region = 97 }
 0x513   : > { %s1995_s29 = smov %s1990_s1 }
 0x517   :  { %1198 = vsyncpa [#allocation9], 1 }
 0x518   :  { %1200 = vsyncpa [#allocation9 + $0x1], 1 }

</bundles_post_ra>
